<compile_context>
chip_gen: v7x
topology: tpu7x:2x2x1
jax: 0.10.0
libtpu: 0.0.40
codegen_flags: <defaults>
</compile_context>

<pallas_src>
import jax
import jax.numpy as jnp
from jax.experimental import pallas as pl
from jax.experimental.pallas import tpu as pltpu

EPS = 1e-5


def _make_kanres_kernel(N, C_in, C1, C2, K1, K2, L1, L2, stride):
    """Builds the fused conv-BN-ReLU x2 kernel for the given static shapes."""

    def _bn_relu(z, gb_ref, count):
        # z: (C, N*L) f32.  Training-mode BatchNorm1d (biased batch variance),
        # single pass: var = E[z^2] - mean^2.  Kept in f32 -- adequate here;
        # for large-mean / tiny-variance channels prefer the two-pass form.
        inv = 1.0 / float(count)
        mean = jnp.sum(z, axis=1, keepdims=True) * inv                 # (C, 1)
        var = jnp.sum(z * z, axis=1, keepdims=True) * inv - mean * mean
        a = gb_ref[:, 0:1] * jax.lax.rsqrt(var + EPS)                  # gamma * rsqrt
        b = gb_ref[:, 1:2] - a * mean                                  # beta - a*mean
        return jnp.maximum(a * z + b, 0.0)                             # fused affine+ReLU

    def kernel(xph_ref, w1_ref, w2_ref, gb1_ref, gb2_ref, o_ref,
               slab1_ref, slab2_ref):
        # ---- conv1 im2col slab (K1*C_in, N*L1), built once in VMEM from
        #      contiguous slices of the phase-split input.  Tap k = q*stride+r
        #      of batch n is xph[r*N + n, :, q : q+L1].  VALID conv => these
        #      slices never touch the zero pad added by _to_phases.
        for n in range(N):
            for k in range(K1):
                r, q = k % stride, k // stride
                slab1_ref[k * C_in:(k + 1) * C_in, n * L1:(n + 1) * L1] = \
                    xph_ref[r * N + n, :, q:q + L1]

        # ---- conv1: ONE MXU contraction.  b1 cancels inside BN1 (batch stats).
        y1 = jnp.dot(w1_ref[...], slab1_ref[...],
                     preferred_element_type=jnp.float32)               # (C1, N*L1) f32
        y1 = _bn_relu(y1, gb1_ref, N * L1)

        # ---- conv2 im2col slab (K2*C1, N*L2) from y1 (bf16 for the MXU);
        #      every slice stays inside its batch's length block.
        y1b = y1.astype(jnp.bfloat16)
        for n in range(N):
            for k in range(K2):
                slab2_ref[k * C1:(k + 1) * C1, n * L2:(n + 1) * L2] = \
                    y1b[:, n * L1 + k:n * L1 + k + L2]

        # ---- conv2: ONE MXU contraction.  b2 cancels inside BN2.
        y2 = jnp.dot(w2_ref[...], slab2_ref[...],
                     preferred_element_type=jnp.float32)               # (C2, N*L2) f32

        # Lane-dense single store: channels on sublanes, N*L2 on lanes.
        o_ref[...] = _bn_relu(y2, gb2_ref, N * L2)

    return kernel


def _to_phases(x_ncl, stride):
    """(N, C, L) f32 -> (stride*N, C, ceil(L/stride)) bf16,
    xph[r*N+n, c, q] = x[n, c, q*stride + r].

    Pure layout + dtype convert; XLA fuses it with the required f32->bf16 cast,
    so it adds no HBM pass beyond the cast itself.  It exists because Mosaic
    has no element-strided load along the minormost (lane) axis, so the kernel
    only ever issues contiguous slices.
    """
    N, C, L = x_ncl.shape
    Lq = -(-L // stride)
    pad = Lq * stride - L
    if pad:
        x_ncl = jnp.pad(x_ncl, ((0, 0), (0, 0), (0, pad)))
    xp = jnp.transpose(x_ncl.reshape(N, C, Lq, stride), (3, 0, 1, 2))
    return xp.reshape(stride * N, C, Lq).astype(jnp.bfloat16)


def kan_res_init_forward(x_ncl, params, stride):
    """x_ncl: (N, C_in, L) f32 -> (N, filterno_2, L_out2) f32 (PyTorch NCL layout)."""
    N, C_in, L = x_ncl.shape
    w1, w2 = params["w1"], params["w2"]
    C1, _, K1 = w1.shape
    C2, _, K2 = w2.shape
    L1 = (L - K1) // stride + 1
    L2 = L1 - K2 + 1
    # VALID conv invariant: last tap of the last window is in-bounds, hence the
    # in-kernel slices never read the zero pad appended by _to_phases.
    assert (L1 - 1) * stride + K1 <= L and L2 >= 1

    # Host-side prep (tiny, layout-only, fused with the bf16 cast):
    xph = _to_phases(x_ncl, stride)                                    # bf16
    # Fold taps into the contraction axis: wf[o, k*C_in + c] = w[o, c, k].
    w1f = jnp.transpose(w1, (0, 2, 1)).reshape(C1, K1 * C_in).astype(jnp.bfloat16)
    w2f = jnp.transpose(w2, (0, 2, 1)).reshape(C2, K2 * C1).astype(jnp.bfloat16)
    gb1 = jnp.stack([params["g1"], params["beta1"]], axis=1)           # (C1, 2) f32
    gb2 = jnp.stack([params["g2"], params["beta2"]], axis=1)           # (C2, 2) f32
    # Conv biases b1/b2 cancel inside training-mode BatchNorm's mean
    # subtraction, so the forward output does not depend on them.

    kernel = _make_kanres_kernel(N, C_in, C1, C2, K1, K2, L1, L2, stride)

    # Single block, no grid: all operands (a few KB) live in VMEM for the whole
    # call; dropping the grid removes per-grid-step bookkeeping.
    out_flat = pl.pallas_call(
        kernel,
        out_shape=jax.ShapeDtypeStruct((C2, N * L2), jnp.float32),
        in_specs=[pl.BlockSpec(memory_space=pltpu.MemorySpace.VMEM)
                  for _ in range(5)],
        out_specs=pl.BlockSpec(memory_space=pltpu.MemorySpace.VMEM),
        scratch_shapes=[
            pltpu.VMEM((K1 * C_in, N * L1), jnp.bfloat16),   # conv1 im2col slab
            pltpu.VMEM((K2 * C1, N * L2), jnp.bfloat16),     # conv2 im2col slab
        ],
    )(xph, w1f, w2f, gb1, gb2)

    # Layout plumbing only: lane-dense (C2, N*L2) kernel output -> module NCL.
    return jnp.transpose(out_flat.reshape(C2, N, L2), (1, 0, 2))


def init_params(key, in_channels, filterno_1, filterno_2, filtersize_1, filtersize_2):
    k1, k2, k3, k4 = jax.random.split(key, 4)
    return {
        "w1": jax.random.normal(k1, (filterno_1, in_channels, filtersize_1), jnp.float32) * 0.1,
        "b1": jax.random.normal(k2, (filterno_1,), jnp.float32) * 0.1,
        "g1": jnp.ones((filterno_1,), jnp.float32),
        "beta1": jnp.zeros((filterno_1,), jnp.float32),
        "w2": jax.random.normal(k3, (filterno_2, filterno_1, filtersize_2), jnp.float32) * 0.1,
        "b2": jax.random.normal(k4, (filterno_2,), jnp.float32) * 0.1,
        "g2": jnp.ones((filterno_2,), jnp.float32),
        "beta2": jnp.zeros((filterno_2,), jnp.float32),
    }


def _reference_forward(x, params, stride):
    """Pure-JAX f32 reference (conv biases included; they cancel inside BN)."""
    def conv1d(x, w, s):
        return jax.lax.conv_general_dilated(
            x, w, window_strides=(s,), padding="VALID",
            dimension_numbers=("NCH", "OIH", "NCH"),
            precision=jax.lax.Precision.HIGHEST)

    def bn_relu(y, g, b):
        mean = jnp.mean(y, axis=(0, 2), keepdims=True)
        var = jnp.mean((y - mean) ** 2, axis=(0, 2), keepdims=True)
        yn = (y - mean) * jax.lax.rsqrt(var + EPS) * g[None, :, None] + b[None, :, None]
        return jnp.maximum(yn, 0.0)

    y = conv1d(x, params["w1"], stride) + params["b1"][None, :, None]
    y = bn_relu(y, params["g1"], params["beta1"])
    y = conv1d(y, params["w2"], 1) + params["b2"][None, :, None]
    y = bn_relu(y, params["g2"], params["beta2"])
    return y


if __name__ == "__main__":
    # Module hyperparameters (small, consistent with the PyTorch module).
    in_channels, filterno_1, filterno_2 = 4, 8, 16
    filtersize_1, filtersize_2, stride = 5, 3, 2
    N, L = 2, 64

    key = jax.random.PRNGKey(0)
    kx, kp = jax.random.split(key)
    x = jax.random.normal(kx, (N, in_channels, L), jnp.float32)
    params = init_params(kp, in_channels, filterno_1, filterno_2,
                         filtersize_1, filtersize_2)

    fwd = jax.jit(kan_res_init_forward, static_argnums=(2,))
    out = jax.block_until_ready(fwd(x, params, stride))

    L1 = (L - filtersize_1) // stride + 1
    L2 = L1 - filtersize_2 + 1
    assert out.shape == (N, filterno_2, L2), out.shape
    assert bool(jnp.all(jnp.isfinite(out)))
    assert bool(jnp.all(out >= 0.0))  # ReLU output

    # Compare against a pure-f32 reference; the kernel feeds bf16 operands to
    # the MXU (f32 accumulation), so allow a slightly relaxed tolerance.
    ref = _reference_forward(x, params, stride)
    assert bool(jnp.allclose(out, ref, atol=3e-2, rtol=3e-2)), \
        float(jnp.max(jnp.abs(out - ref)))

    print("KERNEL_OK")
</pallas_src>

<mosaic_0001>
module attributes {stable_mosaic.version = 11 : i64} {
  func.func @kernel(%arg0: memref<4x4x32xbf16, #tpu.memory_space<vmem>>, %arg1: memref<8x20xbf16, #tpu.memory_space<vmem>>, %arg2: memref<16x24xbf16, #tpu.memory_space<vmem>>, %arg3: memref<8x2xf32, #tpu.memory_space<vmem>>, %arg4: memref<16x2xf32, #tpu.memory_space<vmem>>, %arg5: memref<16x56xf32, #tpu.memory_space<vmem>>, %arg6: memref<20x60xbf16, #tpu.memory_space<vmem>>, %arg7: memref<24x56xbf16, #tpu.memory_space<vmem>>) attributes {dimension_semantics = [], scalar_prefetch = 0 : i64, scratch_operands = 2 : i64, tpu.core_type = #tpu.core_type<tc>} {
    %c0 = arith.constant 0 : index
    %c0_0 = arith.constant 0 : index
    %c0_1 = arith.constant 0 : index
    %0 = vector.load %arg0[%c0, %c0_0, %c0_1] : memref<4x4x32xbf16, #tpu.memory_space<vmem>>, vector<1x4x30xbf16>
    %1 = vector.shape_cast %0 : vector<1x4x30xbf16> to vector<4x30xbf16>
    %c0_2 = arith.constant 0 : index
    %c0_3 = arith.constant 0 : index
    %2 = vector.load %arg6[%c0_2, %c0_3] : memref<20x60xbf16, #tpu.memory_space<vmem>>, vector<4x30xbf16>
    tpu.vector_store %arg6[%c0_2, %c0_3], %1 {strides = array<i32>} : memref<20x60xbf16, #tpu.memory_space<vmem>>, vector<4x30xbf16>,
    %c2 = arith.constant 2 : index
    %c0_4 = arith.constant 0 : index
    %c0_5 = arith.constant 0 : index
    %3 = vector.load %arg0[%c2, %c0_4, %c0_5] : memref<4x4x32xbf16, #tpu.memory_space<vmem>>, vector<1x4x30xbf16>
    %4 = vector.shape_cast %3 : vector<1x4x30xbf16> to vector<4x30xbf16>
    %c4 = arith.constant 4 : index
    %c0_6 = arith.constant 0 : index
    %5 = vector.load %arg6[%c4, %c0_6] : memref<20x60xbf16, #tpu.memory_space<vmem>>, vector<4x30xbf16>
    tpu.vector_store %arg6[%c4, %c0_6], %4 {strides = array<i32>} : memref<20x60xbf16, #tpu.memory_space<vmem>>, vector<4x30xbf16>,
    %c0_7 = arith.constant 0 : index
    %c0_8 = arith.constant 0 : index
    %c1 = arith.constant 1 : index
    %6 = vector.load %arg0[%c0_7, %c0_8, %c1] : memref<4x4x32xbf16, #tpu.memory_space<vmem>>, vector<1x4x30xbf16>
    %7 = vector.shape_cast %6 : vector<1x4x30xbf16> to vector<4x30xbf16>
    %c8 = arith.constant 8 : index
    %c0_9 = arith.constant 0 : index
    %8 = vector.load %arg6[%c8, %c0_9] : memref<20x60xbf16, #tpu.memory_space<vmem>>, vector<4x30xbf16>
    tpu.vector_store %arg6[%c8, %c0_9], %7 {strides = array<i32>} : memref<20x60xbf16, #tpu.memory_space<vmem>>, vector<4x30xbf16>,
    %c2_10 = arith.constant 2 : index
    %c0_11 = arith.constant 0 : index
    %c1_12 = arith.constant 1 : index
    %9 = vector.load %arg0[%c2_10, %c0_11, %c1_12] : memref<4x4x32xbf16, #tpu.memory_space<vmem>>, vector<1x4x30xbf16>
    %10 = vector.shape_cast %9 : vector<1x4x30xbf16> to vector<4x30xbf16>
    %c12 = arith.constant 12 : index
    %c0_13 = arith.constant 0 : index
    %11 = vector.load %arg6[%c12, %c0_13] : memref<20x60xbf16, #tpu.memory_space<vmem>>, vector<4x30xbf16>
    tpu.vector_store %arg6[%c12, %c0_13], %10 {strides = array<i32>} : memref<20x60xbf16, #tpu.memory_space<vmem>>, vector<4x30xbf16>,
    %c0_14 = arith.constant 0 : index
    %c0_15 = arith.constant 0 : index
    %c2_16 = arith.constant 2 : index
    %12 = vector.load %arg0[%c0_14, %c0_15, %c2_16] : memref<4x4x32xbf16, #tpu.memory_space<vmem>>, vector<1x4x30xbf16>
    %13 = vector.shape_cast %12 : vector<1x4x30xbf16> to vector<4x30xbf16>
    %c16 = arith.constant 16 : index
    %c0_17 = arith.constant 0 : index
    %14 = vector.load %arg6[%c16, %c0_17] : memref<20x60xbf16, #tpu.memory_space<vmem>>, vector<4x30xbf16>
    tpu.vector_store %arg6[%c16, %c0_17], %13 {strides = array<i32>} : memref<20x60xbf16, #tpu.memory_space<vmem>>, vector<4x30xbf16>,
    %c1_18 = arith.constant 1 : index
    %c0_19 = arith.constant 0 : index
    %c0_20 = arith.constant 0 : index
    %15 = vector.load %arg0[%c1_18, %c0_19, %c0_20] : memref<4x4x32xbf16, #tpu.memory_space<vmem>>, vector<1x4x30xbf16>
    %16 = vector.shape_cast %15 : vector<1x4x30xbf16> to vector<4x30xbf16>
    %c0_21 = arith.constant 0 : index
    %c30 = arith.constant 30 : index
    %17 = vector.load %arg6[%c0_21, %c30] : memref<20x60xbf16, #tpu.memory_space<vmem>>, vector<4x30xbf16>
    tpu.vector_store %arg6[%c0_21, %c30], %16 {strides = array<i32>} : memref<20x60xbf16, #tpu.memory_space<vmem>>, vector<4x30xbf16>,
    %c3 = arith.constant 3 : index
    %c0_22 = arith.constant 0 : index
    %c0_23 = arith.constant 0 : index
    %18 = vector.load %arg0[%c3, %c0_22, %c0_23] : memref<4x4x32xbf16, #tpu.memory_space<vmem>>, vector<1x4x30xbf16>
    %19 = vector.shape_cast %18 : vector<1x4x30xbf16> to vector<4x30xbf16>
    %c4_24 = arith.constant 4 : index
    %c30_25 = arith.constant 30 : index
    %20 = vector.load %arg6[%c4_24, %c30_25] : memref<20x60xbf16, #tpu.memory_space<vmem>>, vector<4x30xbf16>
    tpu.vector_store %arg6[%c4_24, %c30_25], %19 {strides = array<i32>} : memref<20x60xbf16, #tpu.memory_space<vmem>>, vector<4x30xbf16>,
    %c1_26 = arith.constant 1 : index
    %c0_27 = arith.constant 0 : index
    %c1_28 = arith.constant 1 : index
    %21 = vector.load %arg0[%c1_26, %c0_27, %c1_28] : memref<4x4x32xbf16, #tpu.memory_space<vmem>>, vector<1x4x30xbf16>
    %22 = vector.shape_cast %21 : vector<1x4x30xbf16> to vector<4x30xbf16>
    %c8_29 = arith.constant 8 : index
    %c30_30 = arith.constant 30 : index
    %23 = vector.load %arg6[%c8_29, %c30_30] : memref<20x60xbf16, #tpu.memory_space<vmem>>, vector<4x30xbf16>
    tpu.vector_store %arg6[%c8_29, %c30_30], %22 {strides = array<i32>} : memref<20x60xbf16, #tpu.memory_space<vmem>>, vector<4x30xbf16>,
    %c3_31 = arith.constant 3 : index
    %c0_32 = arith.constant 0 : index
    %c1_33 = arith.constant 1 : index
    %24 = vector.load %arg0[%c3_31, %c0_32, %c1_33] : memref<4x4x32xbf16, #tpu.memory_space<vmem>>, vector<1x4x30xbf16>
    %25 = vector.shape_cast %24 : vector<1x4x30xbf16> to vector<4x30xbf16>
    %c12_34 = arith.constant 12 : index
    %c30_35 = arith.constant 30 : index
    %26 = vector.load %arg6[%c12_34, %c30_35] : memref<20x60xbf16, #tpu.memory_space<vmem>>, vector<4x30xbf16>
    tpu.vector_store %arg6[%c12_34, %c30_35], %25 {strides = array<i32>} : memref<20x60xbf16, #tpu.memory_space<vmem>>, vector<4x30xbf16>,
    %c1_36 = arith.constant 1 : index
    %c0_37 = arith.constant 0 : index
    %c2_38 = arith.constant 2 : index
    %27 = vector.load %arg0[%c1_36, %c0_37, %c2_38] : memref<4x4x32xbf16, #tpu.memory_space<vmem>>, vector<1x4x30xbf16>
    %28 = vector.shape_cast %27 : vector<1x4x30xbf16> to vector<4x30xbf16>
    %c16_39 = arith.constant 16 : index
    %c30_40 = arith.constant 30 : index
    %29 = vector.load %arg6[%c16_39, %c30_40] : memref<20x60xbf16, #tpu.memory_space<vmem>>, vector<4x30xbf16>
    tpu.vector_store %arg6[%c16_39, %c30_40], %28 {strides = array<i32>} : memref<20x60xbf16, #tpu.memory_space<vmem>>, vector<4x30xbf16>,
    %c0_41 = arith.constant 0 : index
    %c0_42 = arith.constant 0 : index
    %30 = vector.load %arg1[%c0_41, %c0_42] : memref<8x20xbf16, #tpu.memory_space<vmem>>, vector<8x20xbf16>
    %c0_43 = arith.constant 0 : index
    %c0_44 = arith.constant 0 : index
    %31 = vector.load %arg6[%c0_43, %c0_44] : memref<20x60xbf16, #tpu.memory_space<vmem>>, vector<20x60xbf16>
    %cst = arith.constant dense<0.000000e+00> : vector<8x60xf32>
    %32 = tpu.matmul %30, %31, %cst {dimension_numbers = #tpu.dot_dimension_numbers<[1], [0], [0], [1], [0, 0, 1, 1], [], []>} : vector<8x20xbf16>, vector<20x60xbf16>, vector<8x60xf32> -> vector<8x60xf32>
    %cst_45 = arith.constant dense<0.000000e+00> : vector<8xf32>
    %33 = vector.multi_reduction <add>, %32, %cst_45 [1] : vector<8x60xf32> to vector<8xf32>
    %34 = vector.shape_cast %33 : vector<8xf32> to vector<8x1xf32>
    %cst_46 = arith.constant 0.0166666675 : f32
    %35 = vector.broadcast %cst_46 : f32 to vector<8x1xf32>
    %36 = arith.mulf %34, %35 : vector<8x1xf32>
    %37 = arith.mulf %32, %32 : vector<8x60xf32>
    %cst_47 = arith.constant dense<0.000000e+00> : vector<8xf32>
    %38 = vector.multi_reduction <add>, %37, %cst_47 [1] : vector<8x60xf32> to vector<8xf32>
    %39 = vector.shape_cast %38 : vector<8xf32> to vector<8x1xf32>
    %cst_48 = arith.constant 0.0166666675 : f32
    %40 = vector.broadcast %cst_48 : f32 to vector<8x1xf32>
    %41 = arith.mulf %39, %40 : vector<8x1xf32>
    %42 = arith.mulf %36, %36 : vector<8x1xf32>
    %43 = arith.subf %41, %42 : vector<8x1xf32>
    %c0_49 = arith.constant 0 : index
    %c0_50 = arith.constant 0 : index
    %44 = vector.load %arg3[%c0_49, %c0_50] : memref<8x2xf32, #tpu.memory_space<vmem>>, vector<8x1xf32>
    %cst_51 = arith.constant 9.99999974E-6 : f32
    %45 = vector.broadcast %cst_51 : f32 to vector<8x1xf32>
    %46 = arith.addf %43, %45 : vector<8x1xf32>
    %47 = math.rsqrt %46 : vector<8x1xf32>
    %48 = arith.mulf %44, %47 : vector<8x1xf32>
    %c0_52 = arith.constant 0 : index
    %c1_53 = arith.constant 1 : index
    %49 = vector.load %arg3[%c0_52, %c1_53] : memref<8x2xf32, #tpu.memory_space<vmem>>, vector<8x1xf32>
    %50 = arith.mulf %48, %36 : vector<8x1xf32>
    %51 = arith.subf %49, %50 : vector<8x1xf32>
    %52 = vector.broadcast %48 : vector<8x1xf32> to vector<8x60xf32>
    %53 = arith.mulf %52, %32 : vector<8x60xf32>
    %54 = vector.broadcast %51 : vector<8x1xf32> to vector<8x60xf32>
    %55 = arith.addf %53, %54 : vector<8x60xf32>
    %cst_54 = arith.constant 0.000000e+00 : f32
    %56 = vector.broadcast %cst_54 : f32 to vector<8x60xf32>
    %57 = arith.maximumf %55, %56 : vector<8x60xf32>
    %58 = arith.truncf %57 : vector<8x60xf32> to vector<8x60xbf16>
    %59 = vector.extract_strided_slice %58 {offsets = [0, 0], sizes = [8, 28], strides = [1, 1]} : vector<8x60xbf16> to vector<8x28xbf16>
    %c0_55 = arith.constant 0 : index
    %c0_56 = arith.constant 0 : index
    %60 = vector.load %arg7[%c0_55, %c0_56] : memref<24x56xbf16, #tpu.memory_space<vmem>>, vector<8x28xbf16>
    tpu.vector_store %arg7[%c0_55, %c0_56], %59 {strides = array<i32>} : memref<24x56xbf16, #tpu.memory_space<vmem>>, vector<8x28xbf16>,
    %61 = vector.extract_strided_slice %58 {offsets = [0, 1], sizes = [8, 28], strides = [1, 1]} : vector<8x60xbf16> to vector<8x28xbf16>
    %c8_57 = arith.constant 8 : index
    %c0_58 = arith.constant 0 : index
    %62 = vector.load %arg7[%c8_57, %c0_58] : memref<24x56xbf16, #tpu.memory_space<vmem>>, vector<8x28xbf16>
    tpu.vector_store %arg7[%c8_57, %c0_58], %61 {strides = array<i32>} : memref<24x56xbf16, #tpu.memory_space<vmem>>, vector<8x28xbf16>,
    %63 = vector.extract_strided_slice %58 {offsets = [0, 2], sizes = [8, 28], strides = [1, 1]} : vector<8x60xbf16> to vector<8x28xbf16>
    %c16_59 = arith.constant 16 : index
    %c0_60 = arith.constant 0 : index
    %64 = vector.load %arg7[%c16_59, %c0_60] : memref<24x56xbf16, #tpu.memory_space<vmem>>, vector<8x28xbf16>
    tpu.vector_store %arg7[%c16_59, %c0_60], %63 {strides = array<i32>} : memref<24x56xbf16, #tpu.memory_space<vmem>>, vector<8x28xbf16>,
    %65 = vector.extract_strided_slice %58 {offsets = [0, 30], sizes = [8, 28], strides = [1, 1]} : vector<8x60xbf16> to vector<8x28xbf16>
    %c0_61 = arith.constant 0 : index
    %c28 = arith.constant 28 : index
    %66 = vector.load %arg7[%c0_61, %c28] : memref<24x56xbf16, #tpu.memory_space<vmem>>, vector<8x28xbf16>
    tpu.vector_store %arg7[%c0_61, %c28], %65 {strides = array<i32>} : memref<24x56xbf16, #tpu.memory_space<vmem>>, vector<8x28xbf16>,
    %67 = vector.extract_strided_slice %58 {offsets = [0, 31], sizes = [8, 28], strides = [1, 1]} : vector<8x60xbf16> to vector<8x28xbf16>
    %c8_62 = arith.constant 8 : index
    %c28_63 = arith.constant 28 : index
    %68 = vector.load %arg7[%c8_62, %c28_63] : memref<24x56xbf16, #tpu.memory_space<vmem>>, vector<8x28xbf16>
    tpu.vector_store %arg7[%c8_62, %c28_63], %67 {strides = array<i32>} : memref<24x56xbf16, #tpu.memory_space<vmem>>, vector<8x28xbf16>,
    %69 = vector.extract_strided_slice %58 {offsets = [0, 32], sizes = [8, 28], strides = [1, 1]} : vector<8x60xbf16> to vector<8x28xbf16>
    %c16_64 = arith.constant 16 : index
    %c28_65 = arith.constant 28 : index
    %70 = vector.load %arg7[%c16_64, %c28_65] : memref<24x56xbf16, #tpu.memory_space<vmem>>, vector<8x28xbf16>
    tpu.vector_store %arg7[%c16_64, %c28_65], %69 {strides = array<i32>} : memref<24x56xbf16, #tpu.memory_space<vmem>>, vector<8x28xbf16>,
    %c0_66 = arith.constant 0 : index
    %c0_67 = arith.constant 0 : index
    %71 = vector.load %arg2[%c0_66, %c0_67] : memref<16x24xbf16, #tpu.memory_space<vmem>>, vector<16x24xbf16>
    %c0_68 = arith.constant 0 : index
    %c0_69 = arith.constant 0 : index
    %72 = vector.load %arg7[%c0_68, %c0_69] : memref<24x56xbf16, #tpu.memory_space<vmem>>, vector<24x56xbf16>
    %cst_70 = arith.constant dense<0.000000e+00> : vector<16x56xf32>
    %73 = tpu.matmul %71, %72, %cst_70 {dimension_numbers = #tpu.dot_dimension_numbers<[1], [0], [0], [1], [0, 0, 1, 1], [], []>} : vector<16x24xbf16>, vector<24x56xbf16>, vector<16x56xf32> -> vector<16x56xf32>
    %cst_71 = arith.constant dense<0.000000e+00> : vector<16xf32>
    %74 = vector.multi_reduction <add>, %73, %cst_71 [1] : vector<16x56xf32> to vector<16xf32>
    %75 = vector.shape_cast %74 : vector<16xf32> to vector<16x1xf32>
    %cst_72 = arith.constant 0.0178571437 : f32
    %76 = vector.broadcast %cst_72 : f32 to vector<16x1xf32>
    %77 = arith.mulf %75, %76 : vector<16x1xf32>
    %78 = arith.mulf %73, %73 : vector<16x56xf32>
    %cst_73 = arith.constant dense<0.000000e+00> : vector<16xf32>
    %79 = vector.multi_reduction <add>, %78, %cst_73 [1] : vector<16x56xf32> to vector<16xf32>
    %80 = vector.shape_cast %79 : vector<16xf32> to vector<16x1xf32>
    %cst_74 = arith.constant 0.0178571437 : f32
    %81 = vector.broadcast %cst_74 : f32 to vector<16x1xf32>
    %82 = arith.mulf %80, %81 : vector<16x1xf32>
    %83 = arith.mulf %77, %77 : vector<16x1xf32>
    %84 = arith.subf %82, %83 : vector<16x1xf32>
    %c0_75 = arith.constant 0 : index
    %c0_76 = arith.constant 0 : index
    %85 = vector.load %arg4[%c0_75, %c0_76] : memref<16x2xf32, #tpu.memory_space<vmem>>, vector<16x1xf32>
    %cst_77 = arith.constant 9.99999974E-6 : f32
    %86 = vector.broadcast %cst_77 : f32 to vector<16x1xf32>
    %87 = arith.addf %84, %86 : vector<16x1xf32>
    %88 = math.rsqrt %87 : vector<16x1xf32>
    %89 = arith.mulf %85, %88 : vector<16x1xf32>
    %c0_78 = arith.constant 0 : index
    %c1_79 = arith.constant 1 : index
    %90 = vector.load %arg4[%c0_78, %c1_79] : memref<16x2xf32, #tpu.memory_space<vmem>>, vector<16x1xf32>
    %91 = arith.mulf %89, %77 : vector<16x1xf32>
    %92 = arith.subf %90, %91 : vector<16x1xf32>
    %93 = vector.broadcast %89 : vector<16x1xf32> to vector<16x56xf32>
    %94 = arith.mulf %93, %73 : vector<16x56xf32>
    %95 = vector.broadcast %92 : vector<16x1xf32> to vector<16x56xf32>
    %96 = arith.addf %94, %95 : vector<16x56xf32>
    %cst_80 = arith.constant 0.000000e+00 : f32
    %97 = vector.broadcast %cst_80 : f32 to vector<16x56xf32>
    %98 = arith.maximumf %96, %97 : vector<16x56xf32>
    %c0_81 = arith.constant 0 : index
    %c0_82 = arith.constant 0 : index
    %99 = vector.load %arg5[%c0_81, %c0_82] : memref<16x56xf32, #tpu.memory_space<vmem>>, vector<16x56xf32>
    tpu.vector_store %arg5[%c0_81, %c0_82], %98 {strides = array<i32>} : memref<16x56xf32, #tpu.memory_space<vmem>>, vector<16x56xf32>,
    return
  }
}

</mosaic_0001>

<bundles_post_ra>
// kernel: kan_res_init_forward.1
= control target key start
LH: loop header
LB: loop body
LE: loop exit
PB: predicated region body
PF: predicated region fallthrough
CT: control target
= control target key end

     0   :  { %v31_v0 = vlaneseq  ;;  %v486_v2 = vmov 1983009808   ;;  %s487_s20 = smov 127   ;;  %s488_s23 = smov 30   ;;  %vm22_vm0 = vcmask 238592   ;;  %v490_v12 = vmov 0.0   ;;  %s604_s0 = inlined_call_operand.vmem [shape: bf16[4,4,32], index: 0, kind: input, shape index: {}]   ;;  %s605_s1 = inlined_call_operand.vmem [shape: bf16[8,20], index: 1, kind: input, shape index: {}]   ;;  %s606_s3 = inlined_call_operand.vmem [shape: f32[8,2], index: 3, kind: input, shape index: {}]   ;;  %s607_s2 = inlined_call_operand.vmem [shape: bf16[16,24], index: 2, kind: input, shape index: {}]   ;;  %s608_s4 = inlined_call_operand.vmem [shape: f32[16,2], index: 4, kind: input, shape index: {}]   ;;  %s609_s5 = inlined_call_operand.vmem [shape: f32[16,56], index: 5, kind: output, shape index: {}]  }
   0x1   :  { %v413_v1 = vld.sshfl [vmem:[%s604_s0] sm:$0x3 pattern:$0x76325410]  ;;  %v29_v3 = vunpack.c.l.s4 %v486_v2  ;;  %s489_s30 = smov 29   ;;  %439 = vmatprep.subr.bf16.mxu0 %v490_v12  ;;  %447 = vmatprep.subr.bf16.mxu1 %v490_v12  ;;  %vm36_vm1 = vcmask 240642  }
   0x2   :  { %47 = vrot.lane.b32.xlu0 %v413_v1, %s487_s20  ;;  %v417_v4 = vld.sshfl [vmem:[%s604_s0 + $0x2] sm:$0x3 pattern:$0x76325410]  ;;  %v32_v5 = vshrl.u32 %v31_v0, 7  ;;  %s491_s10 = smov 126  }
   0x3   :  { %88 = vrot.lane.b32.xlu1 %v417_v4, %s488_s23  ;;  %v30_v6 = vunpack.c.0.s8 %v29_v3  ;;  %v471_v7 = vld [vmem:[%s604_s0 + $0x6] ss:$0 sps:$4 sm:$0x33]   ;;  %v472_v8 = vld [vmem:[%s604_s0 + $0x4] ss:$0 sps:$4 sm:$0x33]  }
   0x4   :  { %v473_v10 = vld [vmem:[%s604_s0 + $0x6] ss:$0 sps:$4 sm:$0x33]   ;;  %v21_v11 = vld [vmem:[%s604_s0] sm:$0x3]  ;;  %vm492_vm2 = vmmov 0  }
   0x5   :  { %v33_v9 = vsub.s32 %v30_v6, %v32_v5  ;;  %23 = vst.msk [vmem:[#allocation2] sm:$0x3] %vm22_vm0, %v21_v11  ;;  %v474_v15 = vld [vmem:[%s604_s0 + $0x4] ss:$0 sps:$4 sm:$0x33]   ;;  %443 = vmatprep.mubr.msk.bf16.mxu0 %vm492_vm2, %v490_v12  ;;  %451 = vmatprep.mubr.msk.bf16.mxu1 %vm492_vm2, %v490_v12  ;;  %s493_s0 = smov 28  }
   0x6   :  { %118 = vrot.lane.b32.xlu0 %v417_v4, %s489_s30  ;;  %vm91_vm3 = vcmask 484592   ;;  %vm107_vm4 = vcmask 486642   ;;  %vm166_vm5 = vcmask 1041408   ;;  %v149_v29 = vld [vmem:[%s605_s1] sm:$0xf]  ;;  %vm162_vm6 = vcmask 162816  }
   0x7   :  { %v103_v13 = vrot.slane %v471_v7, %v33_v9  ;;  %v60_v14 = vrot.slane %v472_v8, %v33_v9  ;;  %v131_v16 = vrot.slane %v473_v10, %v33_v9  ;;  %v34_v17 = vrot.slane %v474_v15, %v33_v9  ;;  %v222_v46 = vld [vmem:[%s606_s3] sm:$0xff]  ;;  %s496_s14 = smov 1   ;;  %s497_s15 = smov 125  }
   0x8   :  { %vm210_vm7 = vcmask 490496   ;;  %v494_v37 = vmov 0   ;;  %v495_v45 = vmov 1   ;;  %vm246_vm8 = vcmask 224256   ;;  %s498_s3 = smov 124  }
   0x9   :  { %104 = vrot.lane.b32.xlu1 %v103_v13, %s488_s23  ;;  %37 = vst.msk [vmem:[#allocation2] sm:$0xc] %vm36_vm1, %v34_v17  ;;  %469 = vset.pattern.permute.xlu0 %v495_v45  ;;  %vm259_vm9 = vcmask 453856   ;;  %vm292_vm10 = vcmask 1043456   ;;  %vm288_vm11 = vcmask 195584   ;;  %vm337_vm12 = vcmask 457728  }
   0xa   :  { %61 = vrot.lane.b32.xlu0 %v60_v14, %s487_s20  ;;  %468 = vset.pattern.permute.xlu1 %v494_v37 }
   0xd   :  { %132 = vrot.lane.b32.xlu1 %v131_v16, %s489_s30 }
   0xe   :  { %74 = vrot.lane.b32.xlu0 %v413_v1, %s491_s10  ;;  %v479_v1 = vld [vmem:[%s607_s2] sm:$0xff]  }
  0x11   :  { %145 = vrot.lane.b32.xlu1 %v417_v4, %s493_s0 }
  0x74   :  { %v48_v18 = vpop.permute.xlu0 %47 }
  0x75   :  { %50 = vst.msk [vmem:[#allocation2 + $0x4] sm:$0x3] %vm22_vm0, %v48_v18  ;;  %v89_v19 = vpop.permute.xlu1 %88 }
  0x76   :  { %92 = vst.msk [vmem:[#allocation2] sm:$0x3] %vm91_vm3, %v89_v19 }
  0x78   :  { %v119_v20 = vpop.permute.xlu0 %118 }
  0x79   :  { %121 = vst.msk [vmem:[#allocation2 + $0x4] sm:$0x3] %vm91_vm3, %v119_v20 }
  0x7b   :  { %v105_v21 = vpop.permute.xlu1 %104 }
  0x7c   :  { %v62_v22 = vpop.permute.xlu0 %61  ;;  %108 = vst.msk [vmem:[#allocation2] sm:$0xc] %vm107_vm4, %v105_v21 }
  0x7d   :  { %64 = vst.msk [vmem:[#allocation2 + $0x4] sm:$0xc] %vm36_vm1, %v62_v22 }
  0x7f   :  { %v133_v23 = vpop.permute.xlu1 %132 }
  0x80   :  { %135 = vst.msk [vmem:[#allocation2 + $0x4] sm:$0xc] %vm107_vm4, %v133_v23  ;;  %v75_v24 = vpop.permute.xlu0 %74 }
  0x81   :  { %77 = vst.msk [vmem:[#allocation2 + $0x8] sm:$0x3] %vm22_vm0, %v75_v24 }
  0x83   :  { %v146_v25 = vpop.permute.xlu1 %145 }
  0x84   :  { %148 = vst.msk [vmem:[#allocation2 + $0x8] sm:$0x3] %vm91_vm3, %v146_v25 }
  0x87   :  { %v475_v26 = vld [vmem:[#allocation2] sm:$0xff]  }
  0x88   :  { %440 = vmatpush3.bf16.msra.mxu0 %v475_v26  ;;  %v360_v26 = vld [vmem:[%s608_s4] sm:$0xff] }
  0x89   :  { %441 = vmatprep.subr.bf16.mxu0 %v490_v12 }
  0x8b   :  { %v476_v27 = vld [vmem:[#allocation2 + $0x8] ss:$0 sps:$4 sm:$0x33]  }
  0x8c   :  { %v168_v28 = vsel %vm166_vm5, %v476_v27, 0 }
  0x8d   :  { %442 = vmatpush3.bf16.msra.mxu0 %v168_v28 }
  0x90   :  { %444 = vmatmul.mubr.msk.bf16.vlgmr.msra.gmra.mrb[0].mxu0 %vm162_vm6, %v149_v29  ;;  %v361_v29 = vld [vmem:[%s608_s4 + $0x8] sm:$0xff] }
 0x163   :  { %v204_v30 = vpop.f32.mrb[0].mxu0 }
 0x164   :  { %v445_v31 = vpop.f32.mrb[1].mxu0  ;;  %v211_v32 = vsel %vm210_vm7, %v204_v30, 0.0  ;;  %v215_v33 = vmul.f32 %v204_v30, %v204_v30 }
 0x165   :  { %212 = vadd.xlane.f32.xlu0 %v211_v32  ;;  %v207_v34 = vpop.f32.mrb[2].mxu0 }
 0x166   :  { %v446_v35 = vpop.f32.mrb[3].mxu0  ;;  %v216_v36 = vsel %vm210_vm7, %v215_v33, 0.0 }
 0x167   :  { %217 = vadd.xlane.f32.xlu1 %v216_v36 }
 0x1f2   :  { %v213_v38 = vpop.xlane.xlu0 %212 }
 0x1f3   :  { %v214_v39 = vmul.f32 0.016666668, %v213_v38 }
 0x1f4   :  { %v218_v40 = vpop.xlane.xlu1 %217 }
 0x1f5   :  { %v220_v41 = vmul.f32 %v214_v39, %v214_v39  ;;  %v219_v42 = vmul.f32 0.016666668, %v218_v40 }
 0x1f7   :  { %v221_v43 = vsub.f32 %v219_v42, %v220_v41 }
 0x1f9   :  { %v223_v44 = vadd.f32 1e-05, %v221_v43 }
 0x1fb   :  { %480 = vrsqrt.f32 %v223_v44 }
 0x205   :  { %v481_v47 = vpop.eup %480 }
 0x206   :  { %v225_v48 = vmul.f32 %v481_v47, %v222_v46 }
 0x208   :  { %234 = vperm.xlu1 %468, %v225_v48   ;;  %v226_v49 = vmul.f32 %v225_v48, %v214_v39 }
 0x20a   :  { %228 = vrot.lane.b32.xlu0 %v226_v49, %s496_s14 }
 0x27c   :  { %v229_v50 = vpop.permute.xlu0 %228 }
 0x27d   :  { %v231_v51 = vsub.f32 %v222_v46, %v229_v50 }
 0x27f   :  { %240 = vperm.xlu0 %469, %v231_v51  }
 0x287   :  { %v235_v52 = vpop.permute.xlu1 %234 }
 0x288   :  { %v237_v53 = vmul.f32 %v235_v52, %v204_v30 }
 0x2fe   :  { %v241_v54 = vpop.permute.xlu0 %240 }
 0x2ff   :  { %v243_v55 = vadd.f32 %v241_v54, %v237_v53 }
 0x301   :  { %v244_v56 = vmax.f32 %v243_v55, 0.0 }
 0x303   :  { %v245_v57 = vpack.c.bf16 %v244_v56, %v244_v56 }
 0x305   :  { %261 = vrot.lane.b32.xlu0 %v245_v57, %s497_s15  ;;  %251 = vrot.lane.b32.xlu1 %v245_v57, %s487_s20  ;;  %247 = vst.msk [vmem:[#allocation3] sm:$0xf] %vm246_vm8, %v245_v57 }
 0x309   :  { %255 = vrot.lane.b32.xlu1 %v245_v57, %s491_s10 }
 0x30d   :  { %265 = vrot.lane.b32.xlu1 %v245_v57, %s498_s3 }
 0x377   :  { %v262_v58 = vpop.permute.xlu0 %261  ;;  %v252_v59 = vpop.permute.xlu1 %251 }
 0x378   :  { %254 = vst.msk [vmem:[#allocation3 + $0x4] sm:$0xf] %vm246_vm8, %v252_v59 }
 0x379   :  { %264 = vst.msk [vmem:[#allocation3 + $0x4] sm:$0xf] %vm259_vm9, %v262_v58 }
 0x37b   :  { %v256_v60 = vpop.permute.xlu1 %255 }
 0x37c   :  { %258 = vst.msk [vmem:[#allocation3 + $0x8] sm:$0xf] %vm246_vm8, %v256_v60 }
 0x37d   :  { %260 = vst.msk [vmem:[#allocation3] sm:$0xf] %vm259_vm9, %v256_v60 }
 0x37f   :  { %v266_v61 = vpop.permute.xlu1 %265 }
 0x380   :  { %268 = vst.msk [vmem:[#allocation3 + $0x8] sm:$0xf] %vm259_vm9, %v266_v61 }
 0x384   :  { %v477_v62 = vld [vmem:[#allocation3] sm:$0xff]  }
 0x385   :  { %448 = vmatpush3.bf16.msra.mxu1 %v477_v62 }
 0x386   :  { %449 = vmatprep.subr.bf16.mxu1 %v490_v12 }
 0x387   :  { %v478_v63 = vld [vmem:[#allocation3 + $0x8] ss:$0 sps:$4 sm:$0xff]  }
 0x388   :  { %v294_v0 = vsel %vm292_vm10, %v478_v63, 0 }
 0x389   :  { %450 = vmatpush3.bf16.msra.mxu1 %v294_v0 }
 0x38c   :  { %452 = vmatmul.mubr.msk.bf16.vlgmr.msra.gmra.mrb[0].mxu1 %vm288_vm11, %v479_v1 }
 0x45f   :  { %v330_v2 = vpop.f32.mrb[0].mxu1 }
 0x460   :  { %v453_v3 = vpop.f32.mrb[1].mxu1  ;;  %v338_v4 = vsel %vm337_vm12, %v330_v2, 0.0  ;;  %v346_v5 = vmul.f32 %v330_v2, %v330_v2 }
 0x461   :  { %339 = vadd.xlane.f32.xlu0 %v338_v4  ;;  %v333_v6 = vpop.f32.mrb[2].mxu1 }
 0x462   :  { %v454_v7 = vpop.f32.mrb[3].mxu1  ;;  %v341_v8 = vsel %vm337_vm12, %v333_v6, 0.0  ;;  %v348_v9 = vsel %vm337_vm12, %v346_v5, 0.0  ;;  %v347_v10 = vmul.f32 %v333_v6, %v333_v6 }
 0x463   :  { %342 = vadd.xlane.f32.xlu1 %v341_v8 }
 0x464   :  { %v351_v11 = vsel %vm337_vm12, %v347_v10, 0.0 }
 0x465   :  { %349 = vadd.xlane.f32.xlu0 %v348_v9 }
 0x469   :  { %352 = vadd.xlane.f32.xlu0 %v351_v11 }
 0x4ee   :  { %v340_v12 = vpop.xlane.xlu0 %339 }
 0x4ef   :  { %v344_v13 = vmul.f32 0.017857144, %v340_v12 }
 0x4f0   :  { %v343_v14 = vpop.xlane.xlu1 %342 }
 0x4f1   :  { %v356_v16 = vmul.f32 %v344_v13, %v344_v13  ;;  %v345_v17 = vmul.f32 0.017857144, %v343_v14 }
 0x4f2   :  { %v350_v15 = vpop.xlane.xlu0 %349 }
 0x4f3   :  { %v354_v18 = vmul.f32 0.017857144, %v350_v15  ;;  %v357_v21 = vmul.f32 %v345_v17, %v345_v17 }
 0x4f5   :  { %v358_v19 = vsub.f32 %v354_v18, %v356_v16 }
 0x4f6   :  { %v353_v20 = vpop.xlane.xlu0 %352 }
 0x4f7   :  { %v362_v22 = vadd.f32 1e-05, %v358_v19  ;;  %v355_v23 = vmul.f32 0.017857144, %v353_v20 }
 0x4f9   :  { %482 = vrsqrt.f32 %v362_v22  ;;  %v359_v24 = vsub.f32 %v355_v23, %v357_v21 }
 0x4fb   :  { %v363_v25 = vadd.f32 1e-05, %v359_v24 }
 0x4fd   :  { %484 = vrsqrt.f32 %v363_v25 }
 0x503   :  { %v483_v27 = vpop.eup %482 }
 0x504   :  { %v366_v28 = vmul.f32 %v483_v27, %v360_v26 }
 0x506   :  { %v368_v30 = vmul.f32 %v366_v28, %v344_v13 }
 0x507   :  { %v485_v31 = vpop.eup %484 }
 0x508   :  { %372 = vrot.lane.b32.xlu1 %v368_v30, %s496_s14  ;;  %v367_v32 = vmul.f32 %v485_v31, %v361_v29 }
 0x50a   :  { %v369_v33 = vmul.f32 %v367_v32, %v345_v17 }
 0x50c   :  { %382 = vperm.xlu1 %468, %v366_v28   ;;  %374 = vrot.lane.b32.xlu0 %v369_v33, %s496_s14 }
 0x510   :  { %387 = vperm.xlu1 %468, %v367_v32  }
 0x514   :  { %470 = vset.pattern.permute.xlu1 %v495_v45 }
 0x57a   :  { %v373_v34 = vpop.permute.xlu1 %372 }
 0x57b   :  { %v378_v35 = vsub.f32 %v360_v26, %v373_v34 }
 0x57d   :  { %394 = vperm.xlu0 %469, %v378_v35  }
 0x57e   :  { %v375_v36 = vpop.permute.xlu0 %374 }
 0x57f   :  { %v379_v37 = vsub.f32 %v361_v29, %v375_v36 }
 0x581   :  { %399 = vperm.xlu1 %470, %v379_v37  }
 0x58b   :  { %v383_v38 = vpop.permute.xlu1 %382 }
 0x58c   :  { %v390_v39 = vmul.f32 %v383_v38, %v330_v2 }
 0x58f   :  { %v388_v40 = vpop.permute.xlu1 %387 }
 0x590   :  { %v391_v43 = vmul.f32 %v388_v40, %v333_v6 }
 0x5fc   :  { %v395_v41 = vpop.permute.xlu0 %394 }
 0x5fd   :  { %v402_v42 = vadd.f32 %v395_v41, %v390_v39 }
 0x5ff   :  { %v404_v44 = vmax.f32 %v402_v42, 0.0 }
 0x600   :  { %v400_v46 = vpop.permute.xlu1 %399 }
 0x601   :  { %406 = vst.msk [vmem:[%s609_s5] sm:$0xff] %vm337_vm12, %v404_v44  ;;  %v403_v45 = vadd.f32 %v400_v46, %v391_v43 }
 0x603   :  { %v405_v47 = vmax.f32 %v403_v45, 0.0 }
 0x605   :  { %407 = vst.msk [vmem:[%s609_s5 + $0x8] sm:$0xff] %vm337_vm12, %v405_v47 }

</bundles_post_ra>
